<compile_context>
chip_gen: v6e
topology: v6e:2x2x1
jax: 0.10.0
libtpu: 0.0.40
codegen_flags: <defaults>
</compile_context>

<pallas_src>
import jax
import jax.numpy as jnp
from jax.experimental import pallas as pl
from jax.experimental.pallas import tpu as pltpu


LANE = 128


def _round_up(a, m):
    return ((a + m - 1) // m) * m


def decoder_kernel(x_ref,
                   w1_ref, b1_ref,
                   w2_ref, b2_ref,
                   wf_ref, bf_ref,
                   o_ref):
    """One batch tile through the whole decoder.  Weights VMEM-resident."""
    num_layers = w1_ref.shape[0]
    h = x_ref[...]                                           # [tile_n, Hp] f32
    for l in range(num_layers):                              # static unroll (L=4)
        # Linear1 (BN1 folded) -> ReLU.  bf16 in / f32 accumulate on the MXU.
        y = jnp.dot(h.astype(jnp.bfloat16), w1_ref[l],
                    preferred_element_type=jnp.float32) + b1_ref[l]
        y = jnp.maximum(y, 0.0)
        # (Dropout p=0 is identity)
        # Linear2 (BN2 folded)
        y = jnp.dot(y.astype(jnp.bfloat16), w2_ref[l],
                    preferred_element_type=jnp.float32) + b2_ref[l]
        # identity skip connection + ReLU (all f32 on the VPU)
        h = jnp.maximum(y + h, 0.0)
    # Final Linear(Hp -> Op), lane-dense store (Op is a multiple of 128).
    o_ref[...] = jnp.dot(h.astype(jnp.bfloat16), wf_ref[...],
                         preferred_element_type=jnp.float32) + bf_ref[...]


def prepare_params(raw_params):
    """Fold eval-mode BN into the Linears, pad H/O to lane multiples,
    cast weights to bf16 (biases stay f32)."""
    w1, b1, s1, t1, w2, b2, s2, t2, wf, bf = raw_params
    # Fold: (x@W + b)*s + t == x@(W*s) + (b*s + t)   (s,t broadcast over 'in')
    w1 = w1 * s1
    b1 = b1 * s1 + t1
    w2 = w2 * s2
    b2 = b2 * s2 + t2

    L, H, _ = w1.shape
    O = wf.shape[1]
    Hp = _round_up(H, LANE)
    Op = _round_up(O, LANE)
    dH, dO = Hp - H, Op - O
    if dH:
        w1 = jnp.pad(w1, ((0, 0), (0, dH), (0, dH)))
        b1 = jnp.pad(b1, ((0, 0), (0, 0), (0, dH)))
        w2 = jnp.pad(w2, ((0, 0), (0, dH), (0, dH)))
        b2 = jnp.pad(b2, ((0, 0), (0, 0), (0, dH)))
        wf = jnp.pad(wf, ((0, dH), (0, 0)))
    if dO:
        wf = jnp.pad(wf, ((0, 0), (0, dO)))
        bf = jnp.pad(bf, ((0, 0), (0, dO)))
    return (w1.astype(jnp.bfloat16), b1.astype(jnp.float32),
            w2.astype(jnp.bfloat16), b2.astype(jnp.float32),
            wf.astype(jnp.bfloat16), bf.astype(jnp.float32))


def decoder_forward(x, prepared_params, dim_outputs, tile_n=256):
    """x: [N, dim_hidden] f32 -> [N, dim_outputs] f32."""
    w1, b1, w2, b2, wf, bf = prepared_params
    L, Hp, _ = w1.shape
    Op = wf.shape[1]
    n, h = x.shape

    x = x.astype(jnp.float32)
    if h != Hp:
        x = jnp.pad(x, ((0, 0), (0, Hp - h)))
    tile_n = int(min(tile_n, _round_up(n, 8)))
    n_pad = _round_up(n, tile_n)
    if n_pad != n:
        x = jnp.pad(x, ((0, n_pad - n), (0, 0)))

    grid = (n_pad // tile_n,)
    out = pl.pallas_call(
        decoder_kernel,
        out_shape=jax.ShapeDtypeStruct((n_pad, Op), jnp.float32),
        grid=grid,
        in_specs=[
            pl.BlockSpec((tile_n, Hp), lambda i: (i, 0)),     # x: tiled over N
            pl.BlockSpec((L, Hp, Hp), lambda i: (0, 0, 0)),   # weights resident
            pl.BlockSpec((L, 1, Hp), lambda i: (0, 0, 0)),
            pl.BlockSpec((L, Hp, Hp), lambda i: (0, 0, 0)),
            pl.BlockSpec((L, 1, Hp), lambda i: (0, 0, 0)),
            pl.BlockSpec((Hp, Op), lambda i: (0, 0)),
            pl.BlockSpec((1, Op), lambda i: (0, 0)),
        ],
        out_specs=pl.BlockSpec((tile_n, Op), lambda i: (i, 0)),
        compiler_params=pltpu.CompilerParams(
            dimension_semantics=("parallel",)),
    )(x, w1, b1, w2, b2, wf, bf)
    return out[:n, :dim_outputs]


def decoder_reference_prec(x, prepared_params):
    """Pure-JAX reference matching the kernel's precision (bf16 matmul inputs,
    f32 accumulation / elementwise)."""
    w1, b1, w2, b2, wf, bf = prepared_params
    Hp = w1.shape[1]
    h = x.astype(jnp.float32)
    if h.shape[1] != Hp:
        h = jnp.pad(h, ((0, 0), (0, Hp - h.shape[1])))
    for l in range(w1.shape[0]):
        y = jnp.dot(h.astype(jnp.bfloat16), w1[l],
                    preferred_element_type=jnp.float32) + b1[l]
        y = jnp.maximum(y, 0.0)
        y = jnp.dot(y.astype(jnp.bfloat16), w2[l],
                    preferred_element_type=jnp.float32) + b2[l]
        h = jnp.maximum(y + h, 0.0)
    return jnp.dot(h.astype(jnp.bfloat16), wf,
                   preferred_element_type=jnp.float32) + bf


def decoder_reference_f32(x, raw_params):
    """Full-precision reference of the original module (eval-mode BN)."""
    w1, b1, s1, t1, w2, b2, s2, t2, wf, bf = raw_params
    h = x
    for l in range(w1.shape[0]):
        y = h @ w1[l] + b1[l]
        y = y * s1[l] + t1[l]
        y = jnp.maximum(y, 0.0)
        y = y @ w2[l] + b2[l]
        y = y * s2[l] + t2[l]
        h = jnp.maximum(y + h, 0.0)
    return h @ wf + bf


def make_params(key, dim_hidden, dim_outputs, num_layers):
    """Deterministic synthetic parameters (eval-mode BN as gamma/beta/mean/var
    already reduced to scale/shift)."""
    ks = jax.random.split(key, 12)
    H, O, L = dim_hidden, dim_outputs, num_layers
    scale = 1.0 / jnp.sqrt(jnp.float32(H))
    w1 = jax.random.normal(ks[0], (L, H, H), jnp.float32) * scale
    b1 = jax.random.normal(ks[1], (L, 1, H), jnp.float32) * 0.1
    w2 = jax.random.normal(ks[2], (L, H, H), jnp.float32) * scale
    b2 = jax.random.normal(ks[3], (L, 1, H), jnp.float32) * 0.1
    eps = 1e-5
    g1 = 1.0 + 0.1 * jax.random.normal(ks[4], (L, 1, H), jnp.float32)
    be1 = 0.1 * jax.random.normal(ks[5], (L, 1, H), jnp.float32)
    m1 = 0.1 * jax.random.normal(ks[6], (L, 1, H), jnp.float32)
    v1 = 1.0 + 0.1 * jax.random.uniform(ks[7], (L, 1, H), jnp.float32)
    s1 = g1 / jnp.sqrt(v1 + eps)
    t1 = be1 - m1 * s1
    g2 = 1.0 + 0.1 * jax.random.normal(ks[8], (L, 1, H), jnp.float32)
    be2 = 0.1 * jax.random.normal(ks[9], (L, 1, H), jnp.float32)
    m2 = 0.1 * jax.random.normal(ks[10], (L, 1, H), jnp.float32)
    v2 = 1.0 + 0.1 * jax.random.uniform(ks[11], (L, 1, H), jnp.float32)
    s2 = g2 / jnp.sqrt(v2 + eps)
    t2 = be2 - m2 * s2
    kf1, kf2 = jax.random.split(jax.random.fold_in(key, 123))
    wf = jax.random.normal(kf1, (H, O), jnp.float32) * scale
    bf = jax.random.normal(kf2, (1, O), jnp.float32) * 0.1
    return (w1, b1, s1, t1, w2, b2, s2, t2, wf, bf)


if __name__ == "__main__":
    # Small shapes consistent with the module defaults:
    # batch=8, dim_hidden=128, dim_outputs=20, num_dec_layers=4
    N, H, O, L = 8, 128, 20, 4
    key = jax.random.PRNGKey(0)
    kx, kp = jax.random.split(key)
    x = jax.random.normal(kx, (N, H), jnp.float32)
    raw_params = make_params(kp, H, O, L)
    params = prepare_params(raw_params)   # BN fold + lane padding + bf16 cast

    out = decoder_forward(x, params, dim_outputs=O)
    out = jax.block_until_ready(out)
    assert out.shape == (N, O)

    # Tight check vs a reference with identical (bf16-in / f32-acc) precision.
    ref_p = decoder_reference_prec(x, params)[:, :O]
    assert jnp.allclose(out, ref_p, atol=1e-3, rtol=1e-3), "mismatch vs bf16 reference"

    # Loose check vs the full-f32 eval-mode module semantics.
    ref_f = decoder_reference_f32(x, raw_params)
    assert jnp.allclose(out, ref_f, atol=1e-1, rtol=1e-1), "mismatch vs f32 reference"

    print("KERNEL_OK")
</pallas_src>

<mosaic_0001>
module attributes {stable_mosaic.version = 11 : i64} {
  func.func @decoder_kernel(%arg0: i32, %arg1: memref<8x128xf32, #tpu.memory_space<vmem>>, %arg2: memref<4x128x128xbf16, #tpu.memory_space<vmem>>, %arg3: memref<4x1x128xf32, #tpu.memory_space<vmem>>, %arg4: memref<4x128x128xbf16, #tpu.memory_space<vmem>>, %arg5: memref<4x1x128xf32, #tpu.memory_space<vmem>>, %arg6: memref<128x128xbf16, #tpu.memory_space<vmem>>, %arg7: memref<1x128xf32, #tpu.memory_space<vmem>>, %arg8: memref<8x128xf32, #tpu.memory_space<vmem>>) attributes {dimension_semantics = [#tpu.dimension_semantics<parallel>], iteration_bounds = array<i64: 1>, scalar_prefetch = 0 : i64, scratch_operands = 0 : i64, tpu.core_type = #tpu.core_type<tc>, window_params = [{transform_indices = @transform_0, window_bounds = array<i64: 8, 128>}, {pipeline_mode = #tpu.pipeline_mode<synchronous>, transform_indices = @transform_1, window_bounds = array<i64: 4, 128, 128>}, {pipeline_mode = #tpu.pipeline_mode<synchronous>, transform_indices = @transform_2, window_bounds = array<i64: 4, 1, 128>}, {pipeline_mode = #tpu.pipeline_mode<synchronous>, transform_indices = @transform_3, window_bounds = array<i64: 4, 128, 128>}, {pipeline_mode = #tpu.pipeline_mode<synchronous>, transform_indices = @transform_4, window_bounds = array<i64: 4, 1, 128>}, {pipeline_mode = #tpu.pipeline_mode<synchronous>, transform_indices = @transform_5, window_bounds = array<i64: 128, 128>}, {pipeline_mode = #tpu.pipeline_mode<synchronous>, transform_indices = @transform_6, window_bounds = array<i64: 1, 128>}, {transform_indices = @transform_7, window_bounds = array<i64: 8, 128>}]} {
    %c0 = arith.constant 0 : index
    %c0_0 = arith.constant 0 : index
    %0 = vector.load %arg1[%c0, %c0_0] : memref<8x128xf32, #tpu.memory_space<vmem>>, vector<8x128xf32>
    %1 = arith.truncf %0 : vector<8x128xf32> to vector<8x128xbf16>
    %c0_1 = arith.constant 0 : index
    %c0_2 = arith.constant 0 : index
    %c0_3 = arith.constant 0 : index
    %2 = vector.load %arg2[%c0_1, %c0_2, %c0_3] : memref<4x128x128xbf16, #tpu.memory_space<vmem>>, vector<1x128x128xbf16>
    %3 = vector.shape_cast %2 : vector<1x128x128xbf16> to vector<128x128xbf16>
    %cst = arith.constant dense<0.000000e+00> : vector<8x128xf32>
    %4 = tpu.matmul %1, %3, %cst {dimension_numbers = #tpu.dot_dimension_numbers<[1], [0], [0], [1], [0, 0, 1, 1], [], []>} : vector<8x128xbf16>, vector<128x128xbf16>, vector<8x128xf32> -> vector<8x128xf32>
    %c0_4 = arith.constant 0 : index
    %c0_5 = arith.constant 0 : index
    %c0_6 = arith.constant 0 : index
    %5 = vector.load %arg3[%c0_4, %c0_5, %c0_6] : memref<4x1x128xf32, #tpu.memory_space<vmem>>, vector<1x1x128xf32>
    %6 = vector.shape_cast %5 : vector<1x1x128xf32> to vector<1x128xf32>
    %7 = vector.broadcast %6 : vector<1x128xf32> to vector<8x128xf32>
    %8 = arith.addf %4, %7 : vector<8x128xf32>
    %cst_7 = arith.constant 0.000000e+00 : f32
    %9 = vector.broadcast %cst_7 : f32 to vector<8x128xf32>
    %10 = arith.maximumf %8, %9 : vector<8x128xf32>
    %11 = arith.truncf %10 : vector<8x128xf32> to vector<8x128xbf16>
    %c0_8 = arith.constant 0 : index
    %c0_9 = arith.constant 0 : index
    %c0_10 = arith.constant 0 : index
    %12 = vector.load %arg4[%c0_8, %c0_9, %c0_10] : memref<4x128x128xbf16, #tpu.memory_space<vmem>>, vector<1x128x128xbf16>
    %13 = vector.shape_cast %12 : vector<1x128x128xbf16> to vector<128x128xbf16>
    %cst_11 = arith.constant dense<0.000000e+00> : vector<8x128xf32>
    %14 = tpu.matmul %11, %13, %cst_11 {dimension_numbers = #tpu.dot_dimension_numbers<[1], [0], [0], [1], [0, 0, 1, 1], [], []>} : vector<8x128xbf16>, vector<128x128xbf16>, vector<8x128xf32> -> vector<8x128xf32>
    %c0_12 = arith.constant 0 : index
    %c0_13 = arith.constant 0 : index
    %c0_14 = arith.constant 0 : index
    %15 = vector.load %arg5[%c0_12, %c0_13, %c0_14] : memref<4x1x128xf32, #tpu.memory_space<vmem>>, vector<1x1x128xf32>
    %16 = vector.shape_cast %15 : vector<1x1x128xf32> to vector<1x128xf32>
    %17 = vector.broadcast %16 : vector<1x128xf32> to vector<8x128xf32>
    %18 = arith.addf %14, %17 : vector<8x128xf32>
    %19 = arith.addf %18, %0 : vector<8x128xf32>
    %cst_15 = arith.constant 0.000000e+00 : f32
    %20 = vector.broadcast %cst_15 : f32 to vector<8x128xf32>
    %21 = arith.maximumf %19, %20 : vector<8x128xf32>
    %22 = arith.truncf %21 : vector<8x128xf32> to vector<8x128xbf16>
    %c1 = arith.constant 1 : index
    %c0_16 = arith.constant 0 : index
    %c0_17 = arith.constant 0 : index
    %23 = vector.load %arg2[%c1, %c0_16, %c0_17] : memref<4x128x128xbf16, #tpu.memory_space<vmem>>, vector<1x128x128xbf16>
    %24 = vector.shape_cast %23 : vector<1x128x128xbf16> to vector<128x128xbf16>
    %cst_18 = arith.constant dense<0.000000e+00> : vector<8x128xf32>
    %25 = tpu.matmul %22, %24, %cst_18 {dimension_numbers = #tpu.dot_dimension_numbers<[1], [0], [0], [1], [0, 0, 1, 1], [], []>} : vector<8x128xbf16>, vector<128x128xbf16>, vector<8x128xf32> -> vector<8x128xf32>
    %c1_19 = arith.constant 1 : index
    %c0_20 = arith.constant 0 : index
    %c0_21 = arith.constant 0 : index
    %26 = vector.load %arg3[%c1_19, %c0_20, %c0_21] : memref<4x1x128xf32, #tpu.memory_space<vmem>>, vector<1x1x128xf32>
    %27 = vector.shape_cast %26 : vector<1x1x128xf32> to vector<1x128xf32>
    %28 = vector.broadcast %27 : vector<1x128xf32> to vector<8x128xf32>
    %29 = arith.addf %25, %28 : vector<8x128xf32>
    %cst_22 = arith.constant 0.000000e+00 : f32
    %30 = vector.broadcast %cst_22 : f32 to vector<8x128xf32>
    %31 = arith.maximumf %29, %30 : vector<8x128xf32>
    %32 = arith.truncf %31 : vector<8x128xf32> to vector<8x128xbf16>
    %c1_23 = arith.constant 1 : index
    %c0_24 = arith.constant 0 : index
    %c0_25 = arith.constant 0 : index
    %33 = vector.load %arg4[%c1_23, %c0_24, %c0_25] : memref<4x128x128xbf16, #tpu.memory_space<vmem>>, vector<1x128x128xbf16>
    %34 = vector.shape_cast %33 : vector<1x128x128xbf16> to vector<128x128xbf16>
    %cst_26 = arith.constant dense<0.000000e+00> : vector<8x128xf32>
    %35 = tpu.matmul %32, %34, %cst_26 {dimension_numbers = #tpu.dot_dimension_numbers<[1], [0], [0], [1], [0, 0, 1, 1], [], []>} : vector<8x128xbf16>, vector<128x128xbf16>, vector<8x128xf32> -> vector<8x128xf32>
    %c1_27 = arith.constant 1 : index
    %c0_28 = arith.constant 0 : index
    %c0_29 = arith.constant 0 : index
    %36 = vector.load %arg5[%c1_27, %c0_28, %c0_29] : memref<4x1x128xf32, #tpu.memory_space<vmem>>, vector<1x1x128xf32>
    %37 = vector.shape_cast %36 : vector<1x1x128xf32> to vector<1x128xf32>
    %38 = vector.broadcast %37 : vector<1x128xf32> to vector<8x128xf32>
    %39 = arith.addf %35, %38 : vector<8x128xf32>
    %40 = arith.addf %39, %21 : vector<8x128xf32>
    %cst_30 = arith.constant 0.000000e+00 : f32
    %41 = vector.broadcast %cst_30 : f32 to vector<8x128xf32>
    %42 = arith.maximumf %40, %41 : vector<8x128xf32>
    %43 = arith.truncf %42 : vector<8x128xf32> to vector<8x128xbf16>
    %c2 = arith.constant 2 : index
    %c0_31 = arith.constant 0 : index
    %c0_32 = arith.constant 0 : index
    %44 = vector.load %arg2[%c2, %c0_31, %c0_32] : memref<4x128x128xbf16, #tpu.memory_space<vmem>>, vector<1x128x128xbf16>
    %45 = vector.shape_cast %44 : vector<1x128x128xbf16> to vector<128x128xbf16>
    %cst_33 = arith.constant dense<0.000000e+00> : vector<8x128xf32>
    %46 = tpu.matmul %43, %45, %cst_33 {dimension_numbers = #tpu.dot_dimension_numbers<[1], [0], [0], [1], [0, 0, 1, 1], [], []>} : vector<8x128xbf16>, vector<128x128xbf16>, vector<8x128xf32> -> vector<8x128xf32>
    %c2_34 = arith.constant 2 : index
    %c0_35 = arith.constant 0 : index
    %c0_36 = arith.constant 0 : index
    %47 = vector.load %arg3[%c2_34, %c0_35, %c0_36] : memref<4x1x128xf32, #tpu.memory_space<vmem>>, vector<1x1x128xf32>
    %48 = vector.shape_cast %47 : vector<1x1x128xf32> to vector<1x128xf32>
    %49 = vector.broadcast %48 : vector<1x128xf32> to vector<8x128xf32>
    %50 = arith.addf %46, %49 : vector<8x128xf32>
    %cst_37 = arith.constant 0.000000e+00 : f32
    %51 = vector.broadcast %cst_37 : f32 to vector<8x128xf32>
    %52 = arith.maximumf %50, %51 : vector<8x128xf32>
    %53 = arith.truncf %52 : vector<8x128xf32> to vector<8x128xbf16>
    %c2_38 = arith.constant 2 : index
    %c0_39 = arith.constant 0 : index
    %c0_40 = arith.constant 0 : index
    %54 = vector.load %arg4[%c2_38, %c0_39, %c0_40] : memref<4x128x128xbf16, #tpu.memory_space<vmem>>, vector<1x128x128xbf16>
    %55 = vector.shape_cast %54 : vector<1x128x128xbf16> to vector<128x128xbf16>
    %cst_41 = arith.constant dense<0.000000e+00> : vector<8x128xf32>
    %56 = tpu.matmul %53, %55, %cst_41 {dimension_numbers = #tpu.dot_dimension_numbers<[1], [0], [0], [1], [0, 0, 1, 1], [], []>} : vector<8x128xbf16>, vector<128x128xbf16>, vector<8x128xf32> -> vector<8x128xf32>
    %c2_42 = arith.constant 2 : index
    %c0_43 = arith.constant 0 : index
    %c0_44 = arith.constant 0 : index
    %57 = vector.load %arg5[%c2_42, %c0_43, %c0_44] : memref<4x1x128xf32, #tpu.memory_space<vmem>>, vector<1x1x128xf32>
    %58 = vector.shape_cast %57 : vector<1x1x128xf32> to vector<1x128xf32>
    %59 = vector.broadcast %58 : vector<1x128xf32> to vector<8x128xf32>
    %60 = arith.addf %56, %59 : vector<8x128xf32>
    %61 = arith.addf %60, %42 : vector<8x128xf32>
    %cst_45 = arith.constant 0.000000e+00 : f32
    %62 = vector.broadcast %cst_45 : f32 to vector<8x128xf32>
    %63 = arith.maximumf %61, %62 : vector<8x128xf32>
    %64 = arith.truncf %63 : vector<8x128xf32> to vector<8x128xbf16>
    %c3 = arith.constant 3 : index
    %c0_46 = arith.constant 0 : index
    %c0_47 = arith.constant 0 : index
    %65 = vector.load %arg2[%c3, %c0_46, %c0_47] : memref<4x128x128xbf16, #tpu.memory_space<vmem>>, vector<1x128x128xbf16>
    %66 = vector.shape_cast %65 : vector<1x128x128xbf16> to vector<128x128xbf16>
    %cst_48 = arith.constant dense<0.000000e+00> : vector<8x128xf32>
    %67 = tpu.matmul %64, %66, %cst_48 {dimension_numbers = #tpu.dot_dimension_numbers<[1], [0], [0], [1], [0, 0, 1, 1], [], []>} : vector<8x128xbf16>, vector<128x128xbf16>, vector<8x128xf32> -> vector<8x128xf32>
    %c3_49 = arith.constant 3 : index
    %c0_50 = arith.constant 0 : index
    %c0_51 = arith.constant 0 : index
    %68 = vector.load %arg3[%c3_49, %c0_50, %c0_51] : memref<4x1x128xf32, #tpu.memory_space<vmem>>, vector<1x1x128xf32>
    %69 = vector.shape_cast %68 : vector<1x1x128xf32> to vector<1x128xf32>
    %70 = vector.broadcast %69 : vector<1x128xf32> to vector<8x128xf32>
    %71 = arith.addf %67, %70 : vector<8x128xf32>
    %cst_52 = arith.constant 0.000000e+00 : f32
    %72 = vector.broadcast %cst_52 : f32 to vector<8x128xf32>
    %73 = arith.maximumf %71, %72 : vector<8x128xf32>
    %74 = arith.truncf %73 : vector<8x128xf32> to vector<8x128xbf16>
    %c3_53 = arith.constant 3 : index
    %c0_54 = arith.constant 0 : index
    %c0_55 = arith.constant 0 : index
    %75 = vector.load %arg4[%c3_53, %c0_54, %c0_55] : memref<4x128x128xbf16, #tpu.memory_space<vmem>>, vector<1x128x128xbf16>
    %76 = vector.shape_cast %75 : vector<1x128x128xbf16> to vector<128x128xbf16>
    %cst_56 = arith.constant dense<0.000000e+00> : vector<8x128xf32>
    %77 = tpu.matmul %74, %76, %cst_56 {dimension_numbers = #tpu.dot_dimension_numbers<[1], [0], [0], [1], [0, 0, 1, 1], [], []>} : vector<8x128xbf16>, vector<128x128xbf16>, vector<8x128xf32> -> vector<8x128xf32>
    %c3_57 = arith.constant 3 : index
    %c0_58 = arith.constant 0 : index
    %c0_59 = arith.constant 0 : index
    %78 = vector.load %arg5[%c3_57, %c0_58, %c0_59] : memref<4x1x128xf32, #tpu.memory_space<vmem>>, vector<1x1x128xf32>
    %79 = vector.shape_cast %78 : vector<1x1x128xf32> to vector<1x128xf32>
    %80 = vector.broadcast %79 : vector<1x128xf32> to vector<8x128xf32>
    %81 = arith.addf %77, %80 : vector<8x128xf32>
    %82 = arith.addf %81, %63 : vector<8x128xf32>
    %cst_60 = arith.constant 0.000000e+00 : f32
    %83 = vector.broadcast %cst_60 : f32 to vector<8x128xf32>
    %84 = arith.maximumf %82, %83 : vector<8x128xf32>
    %85 = arith.truncf %84 : vector<8x128xf32> to vector<8x128xbf16>
    %c0_61 = arith.constant 0 : index
    %c0_62 = arith.constant 0 : index
    %86 = vector.load %arg6[%c0_61, %c0_62] : memref<128x128xbf16, #tpu.memory_space<vmem>>, vector<128x128xbf16>
    %cst_63 = arith.constant dense<0.000000e+00> : vector<8x128xf32>
    %87 = tpu.matmul %85, %86, %cst_63 {dimension_numbers = #tpu.dot_dimension_numbers<[1], [0], [0], [1], [0, 0, 1, 1], [], []>} : vector<8x128xbf16>, vector<128x128xbf16>, vector<8x128xf32> -> vector<8x128xf32>
    %c0_64 = arith.constant 0 : index
    %c0_65 = arith.constant 0 : index
    %88 = vector.load %arg7[%c0_64, %c0_65] : memref<1x128xf32, #tpu.memory_space<vmem>>, vector<1x128xf32>
    %89 = vector.broadcast %88 : vector<1x128xf32> to vector<8x128xf32>
    %90 = arith.addf %87, %89 : vector<8x128xf32>
    %c0_66 = arith.constant 0 : index
    %c0_67 = arith.constant 0 : index
    %91 = vector.load %arg8[%c0_66, %c0_67] : memref<8x128xf32, #tpu.memory_space<vmem>>, vector<8x128xf32>
    tpu.vector_store %arg8[%c0_66, %c0_67], %90 {strides = array<i32>} : memref<8x128xf32, #tpu.memory_space<vmem>>, vector<8x128xf32>,
    return
  }
  func.func @transform_0(%arg0: i32) -> (i32, i32) {
    %c0_i32 = arith.constant 0 : i32
    %c0_i32_0 = arith.constant 0 : i32
    return %arg0, %c0_i32 : i32, i32
  }
  func.func @transform_1(%arg0: i32) -> (i32, i32, i32) {
    %c0_i32 = arith.constant 0 : i32
    %c0_i32_0 = arith.constant 0 : i32
    %c0_i32_1 = arith.constant 0 : i32
    %c0_i32_2 = arith.constant 0 : i32
    return %c0_i32, %c0_i32_0, %c0_i32_1 : i32, i32, i32
  }
  func.func @transform_2(%arg0: i32) -> (i32, i32, i32) {
    %c0_i32 = arith.constant 0 : i32
    %c0_i32_0 = arith.constant 0 : i32
    %c0_i32_1 = arith.constant 0 : i32
    %c0_i32_2 = arith.constant 0 : i32
    return %c0_i32, %c0_i32_0, %c0_i32_1 : i32, i32, i32
  }
  func.func @transform_3(%arg0: i32) -> (i32, i32, i32) {
    %c0_i32 = arith.constant 0 : i32
    %c0_i32_0 = arith.constant 0 : i32
    %c0_i32_1 = arith.constant 0 : i32
    %c0_i32_2 = arith.constant 0 : i32
    return %c0_i32, %c0_i32_0, %c0_i32_1 : i32, i32, i32
  }
  func.func @transform_4(%arg0: i32) -> (i32, i32, i32) {
    %c0_i32 = arith.constant 0 : i32
    %c0_i32_0 = arith.constant 0 : i32
    %c0_i32_1 = arith.constant 0 : i32
    %c0_i32_2 = arith.constant 0 : i32
    return %c0_i32, %c0_i32_0, %c0_i32_1 : i32, i32, i32
  }
  func.func @transform_5(%arg0: i32) -> (i32, i32) {
    %c0_i32 = arith.constant 0 : i32
    %c0_i32_0 = arith.constant 0 : i32
    %c0_i32_1 = arith.constant 0 : i32
    return %c0_i32, %c0_i32_0 : i32, i32
  }
  func.func @transform_6(%arg0: i32) -> (i32, i32) {
    %c0_i32 = arith.constant 0 : i32
    %c0_i32_0 = arith.constant 0 : i32
    %c0_i32_1 = arith.constant 0 : i32
    return %c0_i32, %c0_i32_0 : i32, i32
  }
  func.func @transform_7(%arg0: i32) -> (i32, i32) {
    %c0_i32 = arith.constant 0 : i32
    %c0_i32_0 = arith.constant 0 : i32
    return %arg0, %c0_i32 : i32, i32
  }
}

</mosaic_0001>

<bundles_post_ra>
// kernel: tpu_custom_call.1
= control target key start
LH: loop header
LB: loop body
LE: loop exit
PB: predicated region body
PF: predicated region fallthrough
CT: control target
= control target key end

     0   :  { %12 = vsyncpa [#allocation3], 0  ;;  %s1901_s0 = inlined_call_operand.hbm [shape: f32[8,128], index: 0, kind: input, shape index: {}]   ;;  %s1902_s1 = inlined_call_operand.hbm [shape: bf16[4,128,128], index: 1, kind: input, shape index: {}]   ;;  %s1903_s2 = inlined_call_operand.hbm [shape: f32[4,1,128], index: 2, kind: input, shape index: {}]   ;;  %s1904_s3 = inlined_call_operand.hbm [shape: bf16[4,128,128], index: 3, kind: input, shape index: {}]   ;;  %s1905_s4 = inlined_call_operand.vmem [shape: f32[4,1,128], index: 4, kind: input, shape index: {}]   ;;  %s1906_s5 = inlined_call_operand.hbm [shape: bf16[128,128], index: 5, kind: input, shape index: {}]   ;;  %s1907_s6 = inlined_call_operand.vmem [shape: f32[1,128], index: 6, kind: input, shape index: {}]   ;;  %s1908_s7 = inlined_call_operand.hbm [shape: f32[8,128], index: 7, kind: output, shape index: {}]  }
   0x1   :  { %13 = vsyncpa [#allocation6], 0 }
   0x2   :  { %14 = vsyncpa [#allocation9], 0 }
   0x3   :  { %15 = vsyncpa [#allocation4], 0  ;;  %s1702_s24 = smov [#allocation5]  }
   0x4   :  { %s31_s25 = sshll.u32 %s1702_s24, 4  ;;  %s32_s25 = int_to_ptr.vmem [resolvable:$true] %s31_s25 }
   0x5   :  { %s1582_s26 = scalar_lea.vmem %s32_s25, 4096  ;;  %p1587_p1 = scmp.lt.s32.totalorder %s32_s25, %s32_s25 }
   0x6   :  { %p1583_p0 = scmp.ne.s32.totalorder %s32_s25, %s1582_s26  ;;  %p1588_p2 = scmp.lt.s32.totalorder %s1582_s26, %s1582_s26 }
   0x8   :  { %p1589_p3 = por %p1588_p2, %p1587_p1 }
   0xa   :  { %p1590_p4 = pnand %p1589_p3, %p1583_p0 }
   0xc   :  { %1593 = shalt.err (!%p1590_p4)
}
   0xd   :  { %s1703_s27 = smov 64   ;;  %s1704_s28 = smov 4  }
   0xe   :  { %37 = dma.hbm_to_vmem [thread:$0]  %s1902_s1, 4096, %s32_s25, [#allocation6], %s1703_s27, %s1703_s27, %s1704_s28  }
   0xf   :  { %s1705_s8 = smov [#allocation8]   ;;  %s1706_s10 = smov [#allocation2]  }
  0x10   :  { %s55_s9 = sshll.u32 %s1705_s8, 4  ;;  %s22_s11 = sshll.u32 %s1706_s10, 4  ;;  %s56_s9 = int_to_ptr.vmem [resolvable:$true] %s55_s9  ;;  %s23_s11 = int_to_ptr.vmem [resolvable:$true] %s22_s11 }
  0x11   :  { %s1602_s12 = scalar_lea.vmem %s56_s9, 4096  ;;  %p1607_p6 = scmp.lt.s32.totalorder %s56_s9, %s56_s9 }
  0x12   :  { %p1603_p5 = scmp.ne.s32.totalorder %s56_s9, %s1602_s12  ;;  %p1608_p7 = scmp.lt.s32.totalorder %s1602_s12, %s1602_s12 }
  0x14   :  { %p1609_p8 = por %p1608_p7, %p1607_p6 }
  0x16   :  { %p1610_p9 = pnand %p1609_p8, %p1603_p5 }
  0x18   :  { %1613 = shalt.err (!%p1610_p9)
}
  0x19   :  { %61 = dma.hbm_to_vmem [thread:$0]  %s1904_s3, 4096, %s56_s9, [#allocation9], %s1703_s27, %s1703_s27, %s1704_s28  }
  0x1a   :  { %s1622_s1 = scalar_lea.vmem %s23_s11, 128  ;;  %p1627_p11 = scmp.lt.s32.totalorder %s23_s11, %s23_s11 }
  0x1b   :  { %p1623_p10 = scmp.ne.s32.totalorder %s23_s11, %s1622_s1  ;;  %p1628_p12 = scmp.lt.s32.totalorder %s1622_s1, %s1622_s1 }
  0x1d   :  { %p1629_p13 = por %p1628_p12, %p1627_p11 }
  0x1f   :  { %p1630_p0 = pnand %p1629_p13, %p1623_p10 }
  0x21   :  { %1633 = shalt.err (!%p1630_p0)
}
  0x22   :  { %25 = dma.hbm_to_vmem [thread:$0]  %s1901_s0, 128, %s23_s11, [#allocation3]  }
  0x23   :  { %s1707_s17 = smov [#allocation7]  }
  0x24   :  { %s43_s18 = sshll.u32 %s1707_s17, 4  ;;  %s44_s18 = int_to_ptr.vmem [resolvable:$true] %s43_s18 }
  0x25   :  { %s1642_s19 = scalar_lea.vmem %s44_s18, 64  ;;  %p1647_p2 = scmp.lt.s32.totalorder %s44_s18, %s44_s18 }
  0x26   :  { %p1643_p1 = scmp.ne.s32.totalorder %s44_s18, %s1642_s19  ;;  %p1648_p3 = scmp.lt.s32.totalorder %s1642_s19, %s1642_s19 }
  0x28   :  { %p1649_p4 = por %p1648_p3, %p1647_p2 }
  0x2a   :  { %p1650_p5 = pnand %p1649_p4, %p1643_p1 }
  0x2c   :  { %1653 = shalt.err (!%p1650_p5)
}
  0x2d   :  { %s1708_s3 = smov 16   ;;  %s1709_s20 = smov 1  }
  0x2e   :  { %49 = dma.hbm_to_vmem [thread:$0]  %s1903_s2, 64, %s44_s18, [#allocation6], %s1708_s3, %s1708_s3, %s1709_s20  }
  0x2f   :  { %s1710_s23 = smov [#allocation10]  }
  0x30   :  { %s69_s24 = sshll.u32 %s1710_s23, 4  ;;  %s70_s24 = int_to_ptr.vmem [resolvable:$true] %s69_s24 }
  0x31   :  { %s1662_s0 = scalar_lea.vmem %s70_s24, 1024  ;;  %p1667_p7 = scmp.lt.s32.totalorder %s70_s24, %s70_s24 }
  0x32   :  { %p1663_p6 = scmp.ne.s32.totalorder %s70_s24, %s1662_s0  ;;  %p1668_p8 = scmp.lt.s32.totalorder %s1662_s0, %s1662_s0 }
  0x34   :  { %p1669_p9 = por %p1668_p8, %p1667_p7 }
  0x36   :  { %p1670_p10 = pnand %p1669_p9, %p1663_p6 }
  0x38   :  { %1673 = shalt.err (!%p1670_p10)
}
  0x39   :  { %75 = dma.hbm_to_vmem [thread:$0]  %s1906_s5, 1024, %s70_s24, [#allocation9], %s1703_s27, %s1703_s27, %s1704_s28  }
  0x3a   :  { %1694 = dma.done.wait [#allocation3], 128  }
  0x3b   :  { %1695 = vsyncadd [#allocation3], 4294967168 }
  0x3c   :  { %1696 = dma.done.wait [#allocation6], 4160  }
  0x3d   :  { %1697 = vsyncadd [#allocation6], 4294963136 }
  0x3e   :  { %1698 = dma.done.wait [#allocation9], 5120  }
  0x3f   :  { %1699 = vsyncadd [#allocation9], 4294962176  ;;  %v1711_v0 = vmov 0.0   ;;  %vm1712_vm0 = vmmov 0   ;;  %v1502_v1 = vld [vmem:[#allocation5 + $0x38] sm:$0xff]   ;;  %v1503_v2 = vld [vmem:[#allocation5 + $0x30] sm:$0xff]  }
  0x40   :  { %1310 = vmatprep.subr.bf16.mxu0 %v1711_v0  ;;  %1326 = vmatprep.mubr.msk.bf16.mxu0 %vm1712_vm0, %v1711_v0  ;;  %v1504_v3 = vld [vmem:[#allocation5 + $0x28] sm:$0xff]   ;;  %v1510_v4 = vld [vmem:[#allocation8 + $0x38] sm:$0xff]   ;;  %v1511_v6 = vld [vmem:[#allocation8 + $0x30] sm:$0xff]   ;;  %s1713_s12 = smov [#allocation11]  }
  0x41   :  { %1330 = vmatprep.subr.bf16.mxu1 %v1711_v0  ;;  %1346 = vmatprep.mubr.msk.bf16.mxu1 %vm1712_vm0, %v1711_v0  ;;  %v1505_v5 = vld [vmem:[#allocation5 + $0x20] sm:$0xff]   ;;  %v1506_v7 = vld [vmem:[#allocation5 + $0x18] sm:$0xff]   ;;  %v1512_v8 = vld [vmem:[#allocation8 + $0x28] sm:$0xff]   ;;  %s1134_s13 = sshll.u32 %s1713_s12, 4  ;;  %s1135_s13 = int_to_ptr.vmem [resolvable:$true] %s1134_s13 }
  0x42   :  { %1311 = vmatpush3.bf16.msra.mxu0 %v1502_v1  ;;  %1331 = vmatpush3.bf16.msra.mxu1 %v1510_v4  ;;  %v1507_v9 = vld [vmem:[#allocation5 + $0x10] sm:$0xff]   ;;  %v1513_v10 = vld [vmem:[#allocation8 + $0x20] sm:$0xff]   ;;  %v1514_v12 = vld [vmem:[#allocation8 + $0x18] sm:$0xff]   ;;  %p1679_p12 = scmp.lt.s32.totalorder %s1135_s13, %s1135_s13 }
  0x43   :  { %1312 = vmatprep.subr.bf16.mxu0 %v1711_v0  ;;  %1332 = vmatprep.subr.bf16.mxu1 %v1711_v0  ;;  %v1508_v11 = vld [vmem:[#allocation5 + $0x8] sm:$0xff]   ;;  %v1509_v13 = vld [vmem:[#allocation5] sm:$0xff]   ;;  %v1793_v14 = vld [vmem:[#allocation2] sm:$0xff] }
  0x44   :  { %v1515_v15 = vld [vmem:[#allocation8 + $0x10] sm:$0xff]   ;;  %v95_v16 = vpack.c.bf16 %v1793_v14, %v1793_v14  ;;  %v1516_v17 = vld [vmem:[#allocation8 + $0x8] sm:$0xff]   ;;  %v1517_v18 = vld [vmem:[#allocation8] sm:$0xff]  }
  0x45   :  { %v1518_v19 = vld [vmem:[#allocation5 + $0x78] sm:$0xff]   ;;  %v1519_v20 = vld [vmem:[#allocation5 + $0x70] sm:$0xff]   ;;  %v1520_v21 = vld [vmem:[#allocation5 + $0x68] sm:$0xff]  }
  0x46   :  { %1313 = vmatpush3.bf16.msra.mxu0 %v1503_v2  ;;  %1333 = vmatpush3.bf16.msra.mxu1 %v1511_v6  ;;  %v1521_v22 = vld [vmem:[#allocation5 + $0x60] sm:$0xff]   ;;  %v1522_v23 = vld [vmem:[#allocation5 + $0x58] sm:$0xff]   ;;  %v1523_v24 = vld [vmem:[#allocation5 + $0x50] sm:$0xff]  }
  0x47   :  { %1314 = vmatprep.subr.bf16.mxu0 %v1711_v0  ;;  %1334 = vmatprep.subr.bf16.mxu1 %v1711_v0  ;;  %v1145_v25 = vld [vmem:[#allocation7] ss:$0 sm:$0xff]  ;;  %v1524_v33 = vld [vmem:[#allocation5 + $0x48] sm:$0xff]   ;;  %v1527_v36 = vld [vmem:[#allocation8 + $0x70] sm:$0xff]  }
  0x48   :  { %v1525_v34 = vld [vmem:[#allocation5 + $0x40] sm:$0xff]   ;;  %v1528_v37 = vld [vmem:[#allocation8 + $0x68] sm:$0xff]   ;;  %v1531_v40 = vld [vmem:[#allocation8 + $0x50] sm:$0xff]  }
  0x49   :  { %v1526_v35 = vld [vmem:[#allocation8 + $0x78] sm:$0xff]   ;;  %v1529_v38 = vld [vmem:[#allocation8 + $0x60] sm:$0xff]   ;;  %v1154_v41 = vld [vmem:[%s1905_s4] ss:$0 sm:$0xff] }
  0x4a   :  { %1315 = vmatpush3.bf16.msra.mxu0 %v1504_v3  ;;  %1335 = vmatpush3.bf16.msra.mxu1 %v1512_v8  ;;  %v1530_v39 = vld [vmem:[#allocation8 + $0x58] sm:$0xff]   ;;  %v1532_v50 = vld [vmem:[#allocation8 + $0x48] sm:$0xff]   ;;  %v1533_v51 = vld [vmem:[#allocation8 + $0x40] sm:$0xff]  }
  0x4b   :  { %1316 = vmatprep.subr.bf16.mxu0 %v1711_v0  ;;  %1336 = vmatprep.subr.bf16.mxu1 %v1711_v0  ;;  %v1534_v52 = vld [vmem:[#allocation5 + $0xb8] sm:$0xff]   ;;  %v1535_v53 = vld [vmem:[#allocation5 + $0xb0] sm:$0xff]   ;;  %v1536_v54 = vld [vmem:[#allocation5 + $0xa8] sm:$0xff]  }
  0x4c   :  { %v1537_v55 = vld [vmem:[#allocation5 + $0xa0] sm:$0xff]   ;;  %v1538_v56 = vld [vmem:[#allocation5 + $0x98] sm:$0xff]   ;;  %v1539_v57 = vld [vmem:[#allocation5 + $0x90] sm:$0xff]  }
  0x4d   :  { %v1163_v58 = vld [vmem:[#allocation7 + $0x1] ss:$0 sm:$0xff]  ;;  %v1540_v3 = vld [vmem:[#allocation5 + $0x88] sm:$0xff]   ;;  %v1543_v6 = vld [vmem:[#allocation8 + $0xb0] sm:$0xff]  }
  0x4e   :  { %1317 = vmatpush3.bf16.msra.mxu0 %v1505_v5  ;;  %1337 = vmatpush3.bf16.msra.mxu1 %v1513_v10  ;;  %v1541_v4 = vld [vmem:[#allocation5 + $0x80] sm:$0xff]   ;;  %v1547_v10 = vld [vmem:[#allocation8 + $0x90] sm:$0xff]  }
  0x4f   :  { %1318 = vmatprep.subr.bf16.mxu0 %v1711_v0  ;;  %1338 = vmatprep.subr.bf16.mxu1 %v1711_v0  ;;  %v1542_v5 = vld [vmem:[#allocation8 + $0xb8] sm:$0xff]   ;;  %v1545_v8 = vld [vmem:[#allocation8 + $0xa0] sm:$0xff]  }
  0x52   :  { %1319 = vmatpush3.bf16.msra.mxu0 %v1506_v7  ;;  %1339 = vmatpush3.bf16.msra.mxu1 %v1514_v12  ;;  %v1544_v7 = vld [vmem:[#allocation8 + $0xa8] sm:$0xff]  }
  0x53   :  { %1320 = vmatprep.subr.bf16.mxu0 %v1711_v0  ;;  %1340 = vmatprep.subr.bf16.mxu1 %v1711_v0 }
  0x56   :  { %1321 = vmatpush3.bf16.msra.mxu0 %v1507_v9  ;;  %1341 = vmatpush3.bf16.msra.mxu1 %v1515_v15  ;;  %v1546_v9 = vld [vmem:[#allocation8 + $0x98] sm:$0xff]  }
  0x57   :  { %1322 = vmatprep.subr.bf16.mxu0 %v1711_v0  ;;  %1342 = vmatprep.subr.bf16.mxu1 %v1711_v0 }
  0x5a   :  { %1323 = vmatpush3.bf16.msra.mxu0 %v1508_v11  ;;  %1343 = vmatpush3.bf16.msra.mxu1 %v1516_v17  ;;  %v1173_v11 = vld [vmem:[%s1905_s4 + $0x1] ss:$0 sm:$0xff] }
  0x5b   :  { %1324 = vmatprep.subr.bf16.mxu0 %v1711_v0  ;;  %1344 = vmatprep.subr.bf16.mxu1 %v1711_v0 }
  0x5e   :  { %1325 = vmatpush3.bf16.msra.mxu0 %v1509_v13  ;;  %1345 = vmatpush3.bf16.msra.mxu1 %v1517_v18 }
  0x5f   :  { %1350 = vmatprep.subr.bf16.mxu0 %v1711_v0  ;;  %1370 = vmatprep.subr.bf16.mxu1 %v1711_v0 }
  0x61   :  { %1327 = vmatmul.mubr.bf16.vlgmr.msra.gmra.mxu0 %v95_v16 }
  0x62   :  { %1366 = vmatprep.mubr.msk.bf16.mxu0 %vm1712_vm0, %v1711_v0  ;;  %1351 = vmatpush3.bf16.msra.mxu0 %v1518_v19 }
  0x63   :  { %1352 = vmatprep.subr.bf16.mxu0 %v1711_v0 }
  0x66   :  { %1353 = vmatpush3.bf16.msra.mxu0 %v1519_v20  ;;  %v1548_v20 = vld [vmem:[#allocation8 + $0x88] sm:$0xff]  }
  0x67   :  { %1354 = vmatprep.subr.bf16.mxu0 %v1711_v0 }
  0x6a   :  { %1355 = vmatpush3.bf16.msra.mxu0 %v1520_v21  ;;  %v1549_v21 = vld [vmem:[#allocation8 + $0x80] sm:$0xff]  }
  0x6b   :  { %1356 = vmatprep.subr.bf16.mxu0 %v1711_v0 }
  0x6e   :  { %1357 = vmatpush3.bf16.msra.mxu0 %v1521_v22  ;;  %v1550_v22 = vld [vmem:[#allocation5 + $0xf8] sm:$0xff]  }
  0x6f   :  { %1358 = vmatprep.subr.bf16.mxu0 %v1711_v0 }
  0x72   :  { %1359 = vmatpush3.bf16.msra.mxu0 %v1522_v23  ;;  %v1551_v23 = vld [vmem:[#allocation5 + $0xf0] sm:$0xff]  }
  0x73   :  { %1360 = vmatprep.subr.bf16.mxu0 %v1711_v0 }
  0x76   :  { %1361 = vmatpush3.bf16.msra.mxu0 %v1523_v24  ;;  %v1552_v24 = vld [vmem:[#allocation5 + $0xe8] sm:$0xff]  }
  0x77   :  { %1362 = vmatprep.subr.bf16.mxu0 %v1711_v0 }
  0x7a   :  { %1363 = vmatpush3.bf16.msra.mxu0 %v1524_v33 }
  0x7b   :  { %1364 = vmatprep.subr.bf16.mxu0 %v1711_v0 }
  0x7e   :  { %1365 = vmatpush3.bf16.msra.mxu0 %v1525_v34 }
  0x7f   :  { %1390 = vmatprep.subr.bf16.mxu0 %v1711_v0 }
 0x121   :  { %v201_v26 = vpop.f32.mrf.mxu0 }
 0x122   :  { %v202_v27 = vadd.f32 %v1145_v25, %v201_v26  ;;  %v1553_v25 = vld [vmem:[#allocation5 + $0xe0] sm:$0xff]   ;;  %v1554_v26 = vld [vmem:[#allocation5 + $0xd8] sm:$0xff]  }
 0x123   :  { %v1328_v28 = vpop.f32.mrf.mxu0 }
 0x124   :  { %v207_v29 = vmax.f32 %v202_v27, 0.0  ;;  %v1555_v27 = vld [vmem:[#allocation5 + $0xd0] sm:$0xff]   ;;  %v1182_v28 = vld [vmem:[#allocation7 + $0x2] ss:$0 sm:$0xff] }
 0x125   :  { %v204_v30 = vpop.f32.mrf.mxu0 }
 0x126   :  { %v208_v31 = vpack.c.bf16 %v207_v29, %v207_v29 }
 0x127   :  { %v1329_v32 = vpop.f32.mrf.mxu0 }
 0x128   :  { %1347 = vmatmul.mubr.bf16.vlgmr.msra.gmra.mxu1 %v208_v31 }
 0x129   :  { %1386 = vmatprep.mubr.msk.bf16.mxu1 %vm1712_vm0, %v1711_v0  ;;  %1371 = vmatpush3.bf16.msra.mxu1 %v1526_v35 }
 0x12a   :  { %1372 = vmatprep.subr.bf16.mxu1 %v1711_v0 }
 0x12d   :  { %1373 = vmatpush3.bf16.msra.mxu1 %v1527_v36  ;;  %v1556_v36 = vld [vmem:[#allocation5 + $0xc8] sm:$0xff]  }
 0x12e   :  { %1374 = vmatprep.subr.bf16.mxu1 %v1711_v0 }
 0x131   :  { %1375 = vmatpush3.bf16.msra.mxu1 %v1528_v37  ;;  %v1557_v37 = vld [vmem:[#allocation5 + $0xc0] sm:$0xff]  }
 0x132   :  { %1376 = vmatprep.subr.bf16.mxu1 %v1711_v0 }
 0x135   :  { %1377 = vmatpush3.bf16.msra.mxu1 %v1529_v38  ;;  %v1558_v38 = vld [vmem:[#allocation8 + $0xf8] sm:$0xff]  }
 0x136   :  { %1378 = vmatprep.subr.bf16.mxu1 %v1711_v0 }
 0x139   :  { %1379 = vmatpush3.bf16.msra.mxu1 %v1530_v39  ;;  %v1559_v39 = vld [vmem:[#allocation8 + $0xf0] sm:$0xff]  }
 0x13a   :  { %1380 = vmatprep.subr.bf16.mxu1 %v1711_v0 }
 0x13d   :  { %1381 = vmatpush3.bf16.msra.mxu1 %v1531_v40  ;;  %v1560_v40 = vld [vmem:[#allocation8 + $0xe8] sm:$0xff]  }
 0x13e   :  { %1382 = vmatprep.subr.bf16.mxu1 %v1711_v0 }
 0x141   :  { %1383 = vmatpush3.bf16.msra.mxu1 %v1532_v50 }
 0x142   :  { %1384 = vmatprep.subr.bf16.mxu1 %v1711_v0 }
 0x145   :  { %1385 = vmatpush3.bf16.msra.mxu1 %v1533_v51 }
 0x146   :  { %1410 = vmatprep.subr.bf16.mxu1 %v1711_v0 }
 0x1e8   :  { %v314_v42 = vpop.f32.mrf.mxu1 }
 0x1e9   :  { %v315_v43 = vadd.f32 %v1154_v41, %v314_v42  ;;  %v1561_v41 = vld [vmem:[#allocation8 + $0xe0] sm:$0xff]   ;;  %v1562_v42 = vld [vmem:[#allocation8 + $0xd8] sm:$0xff]  }
 0x1ea   :  { %v1348_v44 = vpop.f32.mrf.mxu1 }
 0x1eb   :  { %v320_v45 = vadd.f32 %v315_v43, %v1793_v14  ;;  %v1563_v43 = vld [vmem:[#allocation8 + $0xd0] sm:$0xff]  }
 0x1ec   :  { %v317_v46 = vpop.f32.mrf.mxu1  ;;  %v1192_v44 = vld [vmem:[%s1905_s4 + $0x2] ss:$0 sm:$0xff] }
 0x1ed   :  { %v1826_v47 = vmax.f32 %v320_v45, 0.0 }
 0x1ee   :  { %v1349_v48 = vpop.f32.mrf.mxu1 }
 0x1ef   :  { %v322_v49 = vpack.c.bf16 %v1826_v47, %v1826_v47 }
 0x1f1   :  { %1367 = vmatmul.mubr.bf16.vlgmr.msra.gmra.mxu0 %v322_v49 }
 0x1f2   :  { %1406 = vmatprep.mubr.msk.bf16.mxu0 %vm1712_vm0, %v1711_v0  ;;  %1391 = vmatpush3.bf16.msra.mxu0 %v1534_v52 }
 0x1f3   :  { %1392 = vmatprep.subr.bf16.mxu0 %v1711_v0 }
 0x1f6   :  { %1393 = vmatpush3.bf16.msra.mxu0 %v1535_v53  ;;  %v1564_v53 = vld [vmem:[#allocation8 + $0xc8] sm:$0xff]  }
 0x1f7   :  { %1394 = vmatprep.subr.bf16.mxu0 %v1711_v0 }
 0x1fa   :  { %1395 = vmatpush3.bf16.msra.mxu0 %v1536_v54  ;;  %v1565_v54 = vld [vmem:[#allocation8 + $0xc0] sm:$0xff]  }
 0x1fb   :  { %1396 = vmatprep.subr.bf16.mxu0 %v1711_v0 }
 0x1fe   :  { %1397 = vmatpush3.bf16.msra.mxu0 %v1537_v55  ;;  %v1566_v55 = vld [vmem:[#allocation10 + $0x38] sm:$0xff]  }
 0x1ff   :  { %1398 = vmatprep.subr.bf16.mxu0 %v1711_v0 }
 0x202   :  { %1399 = vmatpush3.bf16.msra.mxu0 %v1538_v56  ;;  %v1567_v56 = vld [vmem:[#allocation10 + $0x30] sm:$0xff]  }
 0x203   :  { %1400 = vmatprep.subr.bf16.mxu0 %v1711_v0 }
 0x206   :  { %1401 = vmatpush3.bf16.msra.mxu0 %v1539_v57  ;;  %v1568_v57 = vld [vmem:[#allocation10 + $0x28] sm:$0xff]  }
 0x207   :  { %1402 = vmatprep.subr.bf16.mxu0 %v1711_v0 }
 0x20a   :  { %1403 = vmatpush3.bf16.msra.mxu0 %v1540_v3 }
 0x20b   :  { %1404 = vmatprep.subr.bf16.mxu0 %v1711_v0 }
 0x20e   :  { %1405 = vmatpush3.bf16.msra.mxu0 %v1541_v4 }
 0x20f   :  { %1430 = vmatprep.subr.bf16.mxu0 %v1711_v0 }
 0x2b1   :  { %v430_v59 = vpop.f32.mrf.mxu0 }
 0x2b2   :  { %v431_v60 = vadd.f32 %v1163_v58, %v430_v59  ;;  %v1569_v58 = vld [vmem:[#allocation10 + $0x20] sm:$0xff]   ;;  %v1570_v59 = vld [vmem:[#allocation10 + $0x18] sm:$0xff]  }
 0x2b3   :  { %v1368_v61 = vpop.f32.mrf.mxu0 }
 0x2b4   :  { %v436_v62 = vmax.f32 %v431_v60, 0.0  ;;  %v1571_v60 = vld [vmem:[#allocation10 + $0x10] sm:$0xff]   ;;  %v1201_v61 = vld [vmem:[#allocation7 + $0x3] ss:$0 sm:$0xff] }
 0x2b5   :  { %v433_v63 = vpop.f32.mrf.mxu0 }
 0x2b6   :  { %v437_v1 = vpack.c.bf16 %v436_v62, %v436_v62 }
 0x2b7   :  { %v1369_v2 = vpop.f32.mrf.mxu0 }
 0x2b8   :  { %1387 = vmatmul.mubr.bf16.vlgmr.msra.gmra.mxu1 %v437_v1 }
 0x2b9   :  { %1426 = vmatprep.mubr.msk.bf16.mxu1 %vm1712_vm0, %v1711_v0  ;;  %1411 = vmatpush3.bf16.msra.mxu1 %v1542_v5 }
 0x2ba   :  { %1412 = vmatprep.subr.bf16.mxu1 %v1711_v0 }
 0x2bd   :  { %1413 = vmatpush3.bf16.msra.mxu1 %v1543_v6  ;;  %v1572_v6 = vld [vmem:[#allocation10 + $0x8] sm:$0xff]  }
 0x2be   :  { %1414 = vmatprep.subr.bf16.mxu1 %v1711_v0 }
 0x2c1   :  { %1415 = vmatpush3.bf16.msra.mxu1 %v1544_v7  ;;  %v1573_v7 = vld [vmem:[#allocation10] sm:$0xff]  }
 0x2c2   :  { %1416 = vmatprep.subr.bf16.mxu1 %v1711_v0 }
 0x2c5   :  { %1417 = vmatpush3.bf16.msra.mxu1 %v1545_v8  ;;  %v1211_v8 = vld [vmem:[%s1905_s4 + $0x3] ss:$0 sm:$0xff]  ;;  %s1674_s4 = scalar_lea.vmem %s1135_s13, 128 }
 0x2c6   :  { %1418 = vmatprep.subr.bf16.mxu1 %v1711_v0  ;;  %p1675_p11 = scmp.ne.s32.totalorder %s1135_s13, %s1674_s4  ;;  %p1680_p13 = scmp.lt.s32.totalorder %s1674_s4, %s1674_s4 }
 0x2c8   :  { %p1681_p0 = por %p1680_p13, %p1679_p12 }
 0x2c9   :  { %1419 = vmatpush3.bf16.msra.mxu1 %v1546_v9 }
 0x2ca   :  { %1420 = vmatprep.subr.bf16.mxu1 %v1711_v0  ;;  %p1682_p1 = pnand %p1681_p0, %p1675_p11 }
 0x2cd   :  { %1421 = vmatpush3.bf16.msra.mxu1 %v1547_v10 }
 0x2ce   :  { %1422 = vmatprep.subr.bf16.mxu1 %v1711_v0 }
 0x2d1   :  { %1423 = vmatpush3.bf16.msra.mxu1 %v1548_v20 }
 0x2d2   :  { %1424 = vmatprep.subr.bf16.mxu1 %v1711_v0 }
 0x2d5   :  { %1425 = vmatpush3.bf16.msra.mxu1 %v1549_v21 }
 0x2d6   :  { %1450 = vmatprep.subr.bf16.mxu1 %v1711_v0 }
 0x378   :  { %v545_v12 = vpop.f32.mrf.mxu1 }
 0x379   :  { %v546_v13 = vadd.f32 %v1173_v11, %v545_v12 }
 0x37a   :  { %v1388_v14 = vpop.f32.mrf.mxu1 }
 0x37b   :  { %v551_v15 = vadd.f32 %v546_v13, %v1826_v47 }
 0x37c   :  { %v548_v16 = vpop.f32.mrf.mxu1 }
 0x37d   :  { %v1854_v17 = vmax.f32 %v551_v15, 0.0 }
 0x37e   :  { %v1389_v18 = vpop.f32.mrf.mxu1 }
 0x37f   :  { %v553_v19 = vpack.c.bf16 %v1854_v17, %v1854_v17 }
 0x381   :  { %1407 = vmatmul.mubr.bf16.vlgmr.msra.gmra.mxu0 %v553_v19 }
 0x382   :  { %1446 = vmatprep.mubr.msk.bf16.mxu0 %vm1712_vm0, %v1711_v0  ;;  %1431 = vmatpush3.bf16.msra.mxu0 %v1550_v22 }
 0x383   :  { %1432 = vmatprep.subr.bf16.mxu0 %v1711_v0 }
 0x386   :  { %1433 = vmatpush3.bf16.msra.mxu0 %v1551_v23 }
 0x387   :  { %1434 = vmatprep.subr.bf16.mxu0 %v1711_v0 }
 0x38a   :  { %1435 = vmatpush3.bf16.msra.mxu0 %v1552_v24 }
 0x38b   :  { %1436 = vmatprep.subr.bf16.mxu0 %v1711_v0 }
 0x38e   :  { %1437 = vmatpush3.bf16.msra.mxu0 %v1553_v25 }
 0x38f   :  { %1438 = vmatprep.subr.bf16.mxu0 %v1711_v0 }
 0x392   :  { %1439 = vmatpush3.bf16.msra.mxu0 %v1554_v26 }
 0x393   :  { %1440 = vmatprep.subr.bf16.mxu0 %v1711_v0 }
 0x396   :  { %1441 = vmatpush3.bf16.msra.mxu0 %v1555_v27 }
 0x397   :  { %1442 = vmatprep.subr.bf16.mxu0 %v1711_v0 }
 0x39a   :  { %1443 = vmatpush3.bf16.msra.mxu0 %v1556_v36 }
 0x39b   :  { %1444 = vmatprep.subr.bf16.mxu0 %v1711_v0 }
 0x39e   :  { %1445 = vmatpush3.bf16.msra.mxu0 %v1557_v37 }
 0x39f   :  { %1470 = vmatprep.subr.bf16.mxu0 %v1711_v0 }
 0x441   :  { %v661_v29 = vpop.f32.mrf.mxu0 }
 0x442   :  { %v662_v30 = vadd.f32 %v1182_v28, %v661_v29 }
 0x443   :  { %v1408_v31 = vpop.f32.mrf.mxu0 }
 0x444   :  { %v667_v32 = vmax.f32 %v662_v30, 0.0 }
 0x445   :  { %v664_v33 = vpop.f32.mrf.mxu0 }
 0x446   :  { %v668_v34 = vpack.c.bf16 %v667_v32, %v667_v32 }
 0x447   :  { %v1409_v35 = vpop.f32.mrf.mxu0 }
 0x448   :  { %1427 = vmatmul.mubr.bf16.vlgmr.msra.gmra.mxu1 %v668_v34 }
 0x449   :  { %1466 = vmatprep.mubr.msk.bf16.mxu1 %vm1712_vm0, %v1711_v0  ;;  %1451 = vmatpush3.bf16.msra.mxu1 %v1558_v38 }
 0x44a   :  { %1452 = vmatprep.subr.bf16.mxu1 %v1711_v0 }
 0x44d   :  { %1453 = vmatpush3.bf16.msra.mxu1 %v1559_v39 }
 0x44e   :  { %1454 = vmatprep.subr.bf16.mxu1 %v1711_v0 }
 0x451   :  { %1455 = vmatpush3.bf16.msra.mxu1 %v1560_v40 }
 0x452   :  { %1456 = vmatprep.subr.bf16.mxu1 %v1711_v0 }
 0x455   :  { %1457 = vmatpush3.bf16.msra.mxu1 %v1561_v41 }
 0x456   :  { %1458 = vmatprep.subr.bf16.mxu1 %v1711_v0 }
 0x459   :  { %1459 = vmatpush3.bf16.msra.mxu1 %v1562_v42 }
 0x45a   :  { %1460 = vmatprep.subr.bf16.mxu1 %v1711_v0 }
 0x45d   :  { %1461 = vmatpush3.bf16.msra.mxu1 %v1563_v43 }
 0x45e   :  { %1462 = vmatprep.subr.bf16.mxu1 %v1711_v0 }
 0x461   :  { %1463 = vmatpush3.bf16.msra.mxu1 %v1564_v53 }
 0x462   :  { %1464 = vmatprep.subr.bf16.mxu1 %v1711_v0 }
 0x465   :  { %1465 = vmatpush3.bf16.msra.mxu1 %v1565_v54 }
 0x508   :  { %v776_v45 = vpop.f32.mrf.mxu1 }
 0x509   :  { %v777_v46 = vadd.f32 %v1192_v44, %v776_v45 }
 0x50a   :  { %v1428_v47 = vpop.f32.mrf.mxu1 }
 0x50b   :  { %v782_v48 = vadd.f32 %v777_v46, %v1854_v17  ;;  %v1220_v17 = vld [vmem:[%s1907_s6] ss:$0 sm:$0xff] }
 0x50c   :  { %v779_v49 = vpop.f32.mrf.mxu1 }
 0x50d   :  { %v783_v50 = vmax.f32 %v782_v48, 0.0 }
 0x50e   :  { %v1429_v51 = vpop.f32.mrf.mxu1 }
 0x50f   :  { %v784_v52 = vpack.c.bf16 %v783_v50, %v783_v50 }
 0x511   :  { %1447 = vmatmul.mubr.bf16.vlgmr.msra.gmra.mxu0 %v784_v52 }
 0x512   :  { %1486 = vmatprep.mubr.msk.bf16.mxu0 %vm1712_vm0, %v1711_v0  ;;  %1471 = vmatpush3.bf16.msra.mxu0 %v1566_v55 }
 0x513   :  { %1472 = vmatprep.subr.bf16.mxu0 %v1711_v0 }
 0x516   :  { %1473 = vmatpush3.bf16.msra.mxu0 %v1567_v56 }
 0x517   :  { %1474 = vmatprep.subr.bf16.mxu0 %v1711_v0 }
 0x51a   :  { %1475 = vmatpush3.bf16.msra.mxu0 %v1568_v57 }
 0x51b   :  { %1476 = vmatprep.subr.bf16.mxu0 %v1711_v0 }
 0x51e   :  { %1477 = vmatpush3.bf16.msra.mxu0 %v1569_v58 }
 0x51f   :  { %1478 = vmatprep.subr.bf16.mxu0 %v1711_v0 }
 0x522   :  { %1479 = vmatpush3.bf16.msra.mxu0 %v1570_v59 }
 0x523   :  { %1480 = vmatprep.subr.bf16.mxu0 %v1711_v0 }
 0x526   :  { %1481 = vmatpush3.bf16.msra.mxu0 %v1571_v60 }
 0x527   :  { %1482 = vmatprep.subr.bf16.mxu0 %v1711_v0 }
 0x52a   :  { %1483 = vmatpush3.bf16.msra.mxu0 %v1572_v6 }
 0x52b   :  { %1484 = vmatprep.subr.bf16.mxu0 %v1711_v0 }
 0x52e   :  { %1485 = vmatpush3.bf16.msra.mxu0 %v1573_v7 }
 0x5d1   :  { %v892_v62 = vpop.f32.mrf.mxu0 }
 0x5d2   :  { %v893_v63 = vadd.f32 %v1201_v61, %v892_v62 }
 0x5d3   :  { %v1448_v1 = vpop.f32.mrf.mxu0 }
 0x5d4   :  { %v898_v2 = vmax.f32 %v893_v63, 0.0 }
 0x5d5   :  { %v895_v3 = vpop.f32.mrf.mxu0 }
 0x5d6   :  { %v899_v4 = vpack.c.bf16 %v898_v2, %v898_v2 }
 0x5d7   :  { %v1449_v5 = vpop.f32.mrf.mxu0 }
 0x5d8   :  { %1467 = vmatmul.mubr.bf16.vlgmr.msra.gmra.mxu1 %v899_v4 }
 0x698   :  { %v1007_v9 = vpop.f32.mrf.mxu1 }
 0x699   :  { %v1008_v10 = vadd.f32 %v1211_v8, %v1007_v9 }
 0x69a   :  { %v1468_v11 = vpop.f32.mrf.mxu1 }
 0x69b   :  { %v1013_v12 = vadd.f32 %v1008_v10, %v783_v50 }
 0x69c   :  { %v1010_v13 = vpop.f32.mrf.mxu1 }
 0x69d   :  { %v1014_v14 = vmax.f32 %v1013_v12, 0.0 }
 0x69e   :  { %v1469_v15 = vpop.f32.mrf.mxu1 }
 0x69f   :  { %v1015_v16 = vpack.c.bf16 %v1014_v14, %v1014_v14 }
 0x6a1   :  { %1487 = vmatmul.mubr.bf16.vlgmr.msra.gmra.mxu0 %v1015_v16 }
 0x761   :  { %v1121_v0 = vpop.f32.mrf.mxu0 }
 0x762   :  { %v1122_v18 = vadd.f32 %v1220_v17, %v1121_v0 }
 0x763   :  { %v1488_v19 = vpop.f32.mrf.mxu0 }
 0x764   :  { %1127 = vst [vmem:[#allocation11] sm:$0xff] %v1122_v18 }
 0x765   :  { %v1124_v20 = vpop.f32.mrf.mxu0 }
 0x766   :  { %1685 = shalt.err (!%p1682_p1)
}
 0x767   :  { %1137 = dma.vmem_to_hbm [thread:$0]  %s1135_s13, 128, %s1908_s7, [#allocation4]   ;;  %v1489_v21 = vpop.f32.mrf.mxu0 }
 0x768   :  { %1700 = dma.done.wait [#allocation4], 128  }
 0x769   :  { %1701 = vsyncadd [#allocation4], 4294967168 }
 0x76a   :  { %1141 = vsyncpa [#allocation3], 1 }
 0x76b   :  { %1142 = vsyncpa [#allocation6], 1 }
 0x76c   :  { %1143 = vsyncpa [#allocation9], 1 }
 0x76d   :  { %1144 = vsyncpa [#allocation4], 1 }

</bundles_post_ra>
